<compile_context>
chip_gen: v5e
topology: v5e:2x2
jax: 0.10.0
libtpu: 0.0.40
codegen_flags: <defaults>
</compile_context>

<pallas_src>
import functools
import math

import jax
import jax.numpy as jnp
from jax.experimental import pallas as pl
from jax.experimental.pallas import tpu as pltpu


def _pixel_shuffle_kernel(x_ref, s_ref, o_ref, acc_ref, *, precision):
    # x_ref:   (c_tile, r*r, H, W)   one (b,t) slice, one channel tile, all (i,j) planes
    # s_ref:   (r*r, W, rwr_pad)     one-hot lane-scatter matrices (constant operand)
    # o_ref:   (c_tile*H, rwr_pad)   lane-dense output slab
    # acc_ref: (c_tile*H, rwr_pad)   f32 accumulator scratch
    c_tile, rr, h, w = x_ref.shape
    # Small static trip count -> fully unrolled; repeated dot += into the same
    # f32 accumulator lets Mosaic keep partials in the MXU result buffer (v7x MRB).
    for ij in range(rr):
        lhs = x_ref[:, ij].reshape(c_tile * h, w)        # channels folded into M
        contrib = jnp.dot(lhs, s_ref[ij],
                          preferred_element_type=jnp.float32,
                          precision=precision)
        if ij == 0:
            acc_ref[...] = contrib
        else:
            acc_ref[...] += contrib                      # disjoint lanes: adds exact zeros
    o_ref[...] = acc_ref[...].astype(o_ref.dtype)        # single cast + store per grid step


def _pick_c_tile(c_out, h, w, r, itemsize, rwr_pad, budget_bytes):
    """Largest sublane-aligned divisor of c_out whose per-step VMEM footprint fits."""
    sub = max(8, 32 // itemsize)                 # packed sublane tile height for this dtype
    align = sub // math.gcd(h, sub)              # (c_tile*h) % sub == 0  <=>  c_tile % align == 0
    per_c = (2 * (r * r) * h * w * itemsize      # double-buffered input block
             + 2 * h * rwr_pad * itemsize        # double-buffered output block
             + h * rwr_pad * 4)                  # f32 accumulator scratch
    cmax = max(1, budget_bytes // max(per_c, 1))
    best = None
    for d in range(1, c_out + 1):
        if c_out % d or d % align:
            continue
        if d <= cmax:
            best = d                             # biggest aligned divisor within budget
        else:
            if best is None:
                best = d                         # smallest aligned divisor (over budget)
            break
    if best is None:
        best = c_out                             # block == full channel dim: always legal
    return int(best)


def pixel_shuffle_2d_ext(x, upscale_factor):
    """Forward of PixelShuffle2DExt: (B, T, C, H, W) -> (B, T, C//r^2, H*r, W*r)."""
    B, T, C, H, W = x.shape
    r = int(upscale_factor)
    assert C % (r * r) == 0, "channels must be divisible by upscale_factor**2"
    c_out = C // (r * r)
    bt = B * T
    rwr = r * W * r
    rwr_pad = pl.cdiv(rwr, 128) * 128            # lane-dense (unmasked) output stores
    itemsize = jnp.dtype(x.dtype).itemsize

    # Generation-aware VMEM budgeting (v7x: 64 MiB/TC, v5e/v6e: 128 MiB).
    try:
        cap = int(pltpu.get_tpu_info().vmem_capacity_bytes)
    except Exception:  # pragma: no cover - conservative fallback
        cap = 128 * 1024 * 1024
    block_budget = min(cap // 2, 48 * 1024 * 1024)

    c_tile = _pick_c_tile(c_out, H, W, r, itemsize, rwr_pad, block_budget)
    n_ct = c_out // c_tile

    working = (2 * c_tile * (r * r) * H * W * itemsize
               + 2 * c_tile * H * rwr_pad * itemsize
               + c_tile * H * rwr_pad * 4
               + 2 * (r * r) * W * rwr_pad * itemsize)
    vmem_limit = int(min(cap * 3 // 4, max(32 * 1024 * 1024, working * 3 // 2)))

    # One-hot scatter matrices: S[i*r+j, w, i*W*r + w*r + j] = 1 (zeros in the lane pad).
    ij = jnp.arange(r * r, dtype=jnp.int32)[:, None, None]
    i_idx, j_idx = ij // r, ij % r
    row = jnp.arange(W, dtype=jnp.int32)[None, :, None]
    lane = jnp.arange(rwr_pad, dtype=jnp.int32)[None, None, :]
    s = (lane == i_idx * (W * r) + row * r + j_idx).astype(x.dtype)

    # Free reshape: (B,T,C,H,W) -> (B*T, C_out, r*r, H, W)
    x6 = x.reshape(bt, c_out, r * r, H, W)

    # Guard matmul precision so the lane scatter stays bit-exact for f32 inputs.
    precision = jax.lax.Precision.HIGHEST if x.dtype == jnp.float32 else None
    kernel = functools.partial(_pixel_shuffle_kernel, precision=precision)

    cost = pl.CostEstimate(
        flops=2 * bt * c_out * (r * r) * H * W * rwr_pad,
        transcendentals=0,
        bytes_accessed=2 * x.size * itemsize + s.size * itemsize,
    )

    out = pl.pallas_call(
        kernel,
        out_shape=jax.ShapeDtypeStruct((bt, c_out * H, rwr_pad), x.dtype),
        grid=(bt, n_ct),
        in_specs=[
            # One (b,t), one channel tile, ALL r*r (i,j) planes per grid step.
            # If profiling shows the input DMA exposed, add pipeline_mode=pl.Buffered(3).
            pl.BlockSpec((None, c_tile, r * r, H, W),
                         lambda b, ct: (b, ct, 0, 0, 0)),
            # Tiny constant operand; constant index_map -> loaded once, stays resident.
            pl.BlockSpec((r * r, W, rwr_pad), lambda b, ct: (0, 0, 0)),
        ],
        out_specs=pl.BlockSpec((None, c_tile * H, rwr_pad),
                               lambda b, ct: (b, ct, 0)),
        scratch_shapes=[pltpu.VMEM((c_tile * H, rwr_pad), jnp.float32)],
        compiler_params=pltpu.CompilerParams(
            dimension_semantics=("parallel", "parallel"),
            vmem_limit_bytes=vmem_limit,
        ),
        cost_estimate=cost,
    )(x6, s)

    if rwr_pad != rwr:
        out = out[:, :, :rwr]
    # Free reshape: (B*T, C_out*H, r*W*r) -> (B, T, C_out, H*r, W*r)
    return out.reshape(B, T, c_out, H * r, W * r)


def _reference(x, r):
    # Pure-JAX reference mirroring torch.nn.PixelShuffle semantics.
    B, T, C, H, W = x.shape
    c_out = C // (r * r)
    y = x.reshape(B * T, c_out, r, r, H, W)
    y = jnp.transpose(y, (0, 1, 4, 2, 5, 3))     # (BT, C_out, H, r, W, r)
    return y.reshape(B, T, c_out, H * r, W * r)


if __name__ == "__main__":
    key = jax.random.PRNGKey(0)
    # C = c_out * r^2 with r=2 -> c_out=2; r*W*r = 128 so output stores are lane-dense.
    B, T, C, H, W = 2, 3, 8, 16, 32
    r = 2
    x = jax.random.normal(key, (B, T, C, H, W), dtype=jnp.float32)

    out = jax.block_until_ready(pixel_shuffle_2d_ext(x, r))
    ref = _reference(x, r)

    assert out.shape == (B, T, C // (r * r), H * r, W * r), out.shape
    assert out.dtype == x.dtype
    # Precision.HIGHEST makes the one-hot scatter matmul exact for f32.
    assert jnp.allclose(out, ref, rtol=0.0, atol=1e-6), "Pallas pixel shuffle mismatch vs reference"
    print("KERNEL_OK")
</pallas_src>

<mosaic_0001>
module attributes {stable_mosaic.version = 11 : i64} {
  func.func @_pixel_shuffle_kernel(%arg0: i32, %arg1: i32, %arg2: memref<1x2x4x16x32xf32, #tpu.memory_space<vmem>>, %arg3: memref<4x32x128xf32, #tpu.memory_space<vmem>>, %arg4: memref<1x32x128xf32, #tpu.memory_space<vmem>>, %arg5: memref<32x128xf32, #tpu.memory_space<vmem>>) attributes {dimension_semantics = [#tpu.dimension_semantics<parallel>, #tpu.dimension_semantics<parallel>], iteration_bounds = array<i64: 6, 1>, scalar_prefetch = 0 : i64, scratch_operands = 1 : i64, tpu.core_type = #tpu.core_type<tc>, window_params = [{transform_indices = @transform_0, window_bounds = array<i64: 1, 2, 4, 16, 32>}, {pipeline_mode = #tpu.pipeline_mode<synchronous>, transform_indices = @transform_1, window_bounds = array<i64: 4, 32, 128>}, {transform_indices = @transform_2, window_bounds = array<i64: 1, 32, 128>}]} {
    %c0 = arith.constant 0 : index
    %c0_0 = arith.constant 0 : index
    %c0_1 = arith.constant 0 : index
    %c0_2 = arith.constant 0 : index
    %c0_3 = arith.constant 0 : index
    %0 = vector.load %arg2[%c0, %c0_0, %c0_1, %c0_2, %c0_3] : memref<1x2x4x16x32xf32, #tpu.memory_space<vmem>>, vector<1x2x1x16x32xf32>
    %1 = vector.shape_cast %0 : vector<1x2x1x16x32xf32> to vector<2x16x32xf32>
    %2 = vector.shape_cast %1 : vector<2x16x32xf32> to vector<32x32xf32>
    %c0_4 = arith.constant 0 : index
    %c0_5 = arith.constant 0 : index
    %c0_6 = arith.constant 0 : index
    %3 = vector.load %arg3[%c0_4, %c0_5, %c0_6] : memref<4x32x128xf32, #tpu.memory_space<vmem>>, vector<1x32x128xf32>
    %4 = vector.shape_cast %3 : vector<1x32x128xf32> to vector<32x128xf32>
    %cst = arith.constant dense<0.000000e+00> : vector<32x128xf32>
    %5 = tpu.matmul %2, %4, %cst {dimension_numbers = #tpu.dot_dimension_numbers<[1], [0], [0], [1], [0, 0, 1, 1], [], []>, precision = #tpu.contract_precision<fp32>} : vector<32x32xf32>, vector<32x128xf32>, vector<32x128xf32> -> vector<32x128xf32>
    %c0_7 = arith.constant 0 : index
    %c0_8 = arith.constant 0 : index
    %6 = vector.load %arg5[%c0_7, %c0_8] : memref<32x128xf32, #tpu.memory_space<vmem>>, vector<32x128xf32>
    tpu.vector_store %arg5[%c0_7, %c0_8], %5 {strides = array<i32>} : memref<32x128xf32, #tpu.memory_space<vmem>>, vector<32x128xf32>,
    %c0_9 = arith.constant 0 : index
    %c0_10 = arith.constant 0 : index
    %c1 = arith.constant 1 : index
    %c0_11 = arith.constant 0 : index
    %c0_12 = arith.constant 0 : index
    %7 = vector.load %arg2[%c0_9, %c0_10, %c1, %c0_11, %c0_12] : memref<1x2x4x16x32xf32, #tpu.memory_space<vmem>>, vector<1x2x1x16x32xf32>
    %8 = vector.shape_cast %7 : vector<1x2x1x16x32xf32> to vector<2x16x32xf32>
    %9 = vector.shape_cast %8 : vector<2x16x32xf32> to vector<32x32xf32>
    %c1_13 = arith.constant 1 : index
    %c0_14 = arith.constant 0 : index
    %c0_15 = arith.constant 0 : index
    %10 = vector.load %arg3[%c1_13, %c0_14, %c0_15] : memref<4x32x128xf32, #tpu.memory_space<vmem>>, vector<1x32x128xf32>
    %11 = vector.shape_cast %10 : vector<1x32x128xf32> to vector<32x128xf32>
    %cst_16 = arith.constant dense<0.000000e+00> : vector<32x128xf32>
    %12 = tpu.matmul %9, %11, %cst_16 {dimension_numbers = #tpu.dot_dimension_numbers<[1], [0], [0], [1], [0, 0, 1, 1], [], []>, precision = #tpu.contract_precision<fp32>} : vector<32x32xf32>, vector<32x128xf32>, vector<32x128xf32> -> vector<32x128xf32>
    %c0_17 = arith.constant 0 : index
    %c0_18 = arith.constant 0 : index
    %13 = vector.load %arg5[%c0_17, %c0_18] : memref<32x128xf32, #tpu.memory_space<vmem>>, vector<32x128xf32>
    %14 = arith.addf %13, %12 : vector<32x128xf32>
    %c0_19 = arith.constant 0 : index
    %c0_20 = arith.constant 0 : index
    %15 = vector.load %arg5[%c0_19, %c0_20] : memref<32x128xf32, #tpu.memory_space<vmem>>, vector<32x128xf32>
    tpu.vector_store %arg5[%c0_19, %c0_20], %14 {strides = array<i32>} : memref<32x128xf32, #tpu.memory_space<vmem>>, vector<32x128xf32>,
    %c0_21 = arith.constant 0 : index
    %c0_22 = arith.constant 0 : index
    %c2 = arith.constant 2 : index
    %c0_23 = arith.constant 0 : index
    %c0_24 = arith.constant 0 : index
    %16 = vector.load %arg2[%c0_21, %c0_22, %c2, %c0_23, %c0_24] : memref<1x2x4x16x32xf32, #tpu.memory_space<vmem>>, vector<1x2x1x16x32xf32>
    %17 = vector.shape_cast %16 : vector<1x2x1x16x32xf32> to vector<2x16x32xf32>
    %18 = vector.shape_cast %17 : vector<2x16x32xf32> to vector<32x32xf32>
    %c2_25 = arith.constant 2 : index
    %c0_26 = arith.constant 0 : index
    %c0_27 = arith.constant 0 : index
    %19 = vector.load %arg3[%c2_25, %c0_26, %c0_27] : memref<4x32x128xf32, #tpu.memory_space<vmem>>, vector<1x32x128xf32>
    %20 = vector.shape_cast %19 : vector<1x32x128xf32> to vector<32x128xf32>
    %cst_28 = arith.constant dense<0.000000e+00> : vector<32x128xf32>
    %21 = tpu.matmul %18, %20, %cst_28 {dimension_numbers = #tpu.dot_dimension_numbers<[1], [0], [0], [1], [0, 0, 1, 1], [], []>, precision = #tpu.contract_precision<fp32>} : vector<32x32xf32>, vector<32x128xf32>, vector<32x128xf32> -> vector<32x128xf32>
    %c0_29 = arith.constant 0 : index
    %c0_30 = arith.constant 0 : index
    %22 = vector.load %arg5[%c0_29, %c0_30] : memref<32x128xf32, #tpu.memory_space<vmem>>, vector<32x128xf32>
    %23 = arith.addf %22, %21 : vector<32x128xf32>
    %c0_31 = arith.constant 0 : index
    %c0_32 = arith.constant 0 : index
    %24 = vector.load %arg5[%c0_31, %c0_32] : memref<32x128xf32, #tpu.memory_space<vmem>>, vector<32x128xf32>
    tpu.vector_store %arg5[%c0_31, %c0_32], %23 {strides = array<i32>} : memref<32x128xf32, #tpu.memory_space<vmem>>, vector<32x128xf32>,
    %c0_33 = arith.constant 0 : index
    %c0_34 = arith.constant 0 : index
    %c3 = arith.constant 3 : index
    %c0_35 = arith.constant 0 : index
    %c0_36 = arith.constant 0 : index
    %25 = vector.load %arg2[%c0_33, %c0_34, %c3, %c0_35, %c0_36] : memref<1x2x4x16x32xf32, #tpu.memory_space<vmem>>, vector<1x2x1x16x32xf32>
    %26 = vector.shape_cast %25 : vector<1x2x1x16x32xf32> to vector<2x16x32xf32>
    %27 = vector.shape_cast %26 : vector<2x16x32xf32> to vector<32x32xf32>
    %c3_37 = arith.constant 3 : index
    %c0_38 = arith.constant 0 : index
    %c0_39 = arith.constant 0 : index
    %28 = vector.load %arg3[%c3_37, %c0_38, %c0_39] : memref<4x32x128xf32, #tpu.memory_space<vmem>>, vector<1x32x128xf32>
    %29 = vector.shape_cast %28 : vector<1x32x128xf32> to vector<32x128xf32>
    %cst_40 = arith.constant dense<0.000000e+00> : vector<32x128xf32>
    %30 = tpu.matmul %27, %29, %cst_40 {dimension_numbers = #tpu.dot_dimension_numbers<[1], [0], [0], [1], [0, 0, 1, 1], [], []>, precision = #tpu.contract_precision<fp32>} : vector<32x32xf32>, vector<32x128xf32>, vector<32x128xf32> -> vector<32x128xf32>
    %c0_41 = arith.constant 0 : index
    %c0_42 = arith.constant 0 : index
    %31 = vector.load %arg5[%c0_41, %c0_42] : memref<32x128xf32, #tpu.memory_space<vmem>>, vector<32x128xf32>
    %32 = arith.addf %31, %30 : vector<32x128xf32>
    %c0_43 = arith.constant 0 : index
    %c0_44 = arith.constant 0 : index
    %33 = vector.load %arg5[%c0_43, %c0_44] : memref<32x128xf32, #tpu.memory_space<vmem>>, vector<32x128xf32>
    tpu.vector_store %arg5[%c0_43, %c0_44], %32 {strides = array<i32>} : memref<32x128xf32, #tpu.memory_space<vmem>>, vector<32x128xf32>,
    %c0_45 = arith.constant 0 : index
    %c0_46 = arith.constant 0 : index
    %34 = vector.load %arg5[%c0_45, %c0_46] : memref<32x128xf32, #tpu.memory_space<vmem>>, vector<32x128xf32>
    %c0_47 = arith.constant 0 : index
    %c0_48 = arith.constant 0 : index
    %c0_49 = arith.constant 0 : index
    %35 = vector.load %arg4[%c0_47, %c0_48, %c0_49] : memref<1x32x128xf32, #tpu.memory_space<vmem>>, vector<1x32x128xf32>
    %36 = vector.shape_cast %35 : vector<1x32x128xf32> to vector<32x128xf32>
    %37 = vector.shape_cast %34 : vector<32x128xf32> to vector<1x32x128xf32>
    tpu.vector_store %arg4[%c0_47, %c0_48, %c0_49], %37 {strides = array<i32>} : memref<1x32x128xf32, #tpu.memory_space<vmem>>, vector<1x32x128xf32>,
    return
  }
  func.func @transform_0(%arg0: i32, %arg1: i32) -> (i32, i32, i32, i32, i32) {
    %c0_i32 = arith.constant 0 : i32
    %c0_i32_0 = arith.constant 0 : i32
    %c0_i32_1 = arith.constant 0 : i32
    %c0_i32_2 = arith.constant 0 : i32
    return %arg0, %arg1, %c0_i32, %c0_i32_0, %c0_i32_1 : i32, i32, i32, i32, i32
  }
  func.func @transform_1(%arg0: i32, %arg1: i32) -> (i32, i32, i32) {
    %c0_i32 = arith.constant 0 : i32
    %c0_i32_0 = arith.constant 0 : i32
    %c0_i32_1 = arith.constant 0 : i32
    %c0_i32_2 = arith.constant 0 : i32
    return %c0_i32, %c0_i32_0, %c0_i32_1 : i32, i32, i32
  }
  func.func @transform_2(%arg0: i32, %arg1: i32) -> (i32, i32, i32) {
    %c0_i32 = arith.constant 0 : i32
    %c0_i32_0 = arith.constant 0 : i32
    return %arg0, %arg1, %c0_i32 : i32, i32, i32
  }
}

</mosaic_0001>

<bundles_post_ra>
// kernel: tpu_custom_call.1
= control target key start
LH: loop header
LB: loop body
LE: loop exit
PB: predicated region body
PF: predicated region fallthrough
CT: control target
= control target key end

     0   :  { %7 = vsyncpa [#allocation4], 0  ;;  %s2336_s0 = inlined_call_operand.hbm [shape: f32[6,2,4,16,32], index: 0, kind: input, shape index: {}]   ;;  %s2337_s1 = inlined_call_operand.hbm [shape: f32[4,32,128], index: 1, kind: input, shape index: {}]   ;;  %s2338_s2 = inlined_call_operand.hbm [shape: f32[6,32,128], index: 2, kind: output, shape index: {}]  }
   0x1   :  { %9 = vsyncpa [#allocation4 + $0x1], 0 }
   0x2   :  { %10 = vsyncpa [#allocation7], 0 }
   0x3   :  { %11 = vsyncpa [#allocation5], 0 }
   0x4   :  { %13 = vsyncpa [#allocation5 + $0x1], 0  ;;  %s1840_s9 = smov 0   ;;  %s1842_s10 = smov 0  }
   0x5   :  { %s1844_s11 = smov 0   ;;  %s1846_s12 = smov 0  }
   0x6   :  { %s1848_s13 = smov 0   ;;  %s1850_s14 = smov 0  }
   0x7 LB: > { %s1564_s15 = sadd.s32 4294967295, %s1818_s14   ;;  %s1565_s16 = sadd.s32 4294967294, %s1818_s14   ;;  %s1818_s14 = sphi %s1850_s14, %s19_s14   ;;  %s1814_s13 = sphi %s1848_s13, %s2350_s13   ;;  %s1810_s12 = sphi %s1846_s12, %s2349_s12   ;;  %s1806_s11 = sphi %s1844_s11, %s2348_s11   ;;  %s1802_s10 = sphi %s1842_s10, %s2347_s10   ;;  %s1798_s9 = sphi %s1840_s9, %s2346_s9  }
   0x8   : > { %p53_p0 = scmp.ne.s32.totalorder %s1802_s10, %s1798_s9  ;;  %p1874_p1 = scmp.eq.s32.totalorder %s1564_s15, 0 }
   0x9   : > { %p1878_p2 = scmp.eq.s32.totalorder %s1564_s15, 5  ;;  %p106_p3 = scmp.eq.s32.totalorder %s1565_s16, 5 }
   0xa   : > { %p1884_p4 = por %p1874_p1, %p53_p0  ;;  %p1566_p5 = scmp.ge.s32.totalorder %s1818_s14, 1 }
   0xb   : > { %p1889_p6 = por %p106_p3, %p53_p0  ;;  %p113_p7 = scmp.lt.s32.totalorder %s1818_s14, 7 }
   0xc   : > { %s124_s23 = sshll.u32 %s2337_s1, 4  ;;  %s1820_s25 = smov [#allocation6]   ;;  %s125_s23 = int_to_ptr.hbm [resolvable:$true] %s124_s23 }
   0xd   : > { %p1897_p8 = pnand %p1566_p5, %p113_p7  ;;  %s126_s26 = sshll.u32 %s1820_s25, 4  ;;  %s127_s26 = int_to_ptr.vmem [resolvable:$true] %s126_s26 }
   0xe   : > { %s1821_s27 = smov 128   ;;  %s1822_s28 = smov 8  }
   0xf   : > { %p1603_p9 = pneg %p1897_p8  ;;  %s31_s29 = sadd.s32 1, %s1814_s13 }
  0x10   : > { %p33_p11 = scmp.ge.s32.totalorder %s31_s29, 6  ;;  %s40_s30 = sadd.s32 1, %s1806_s11 }
  0x11   : > { %p1604_p10 = pnand %p1603_p9, %p1874_p1  ;;  %p47_p12 = scmp.ne.s32.totalorder %s1806_s11, %s1802_s10 }
  0x12   : > { %p48_p13 = scmp.eq.s32.totalorder %s1818_s14, 0  ;;  %s2352_s29 = smov (%p33_p11, %s31_s29), 0 }
  0x13   : > { %1606 = dma.hbm_to_vmem [thread:$0]  (!%p1604_p10), %s125_s23, 2048, %s127_s26, [#allocation7], %s1821_s27, %s1821_s27, %s1822_s28  }
  0x14   : > { %p1915_p0 = por %p48_p13, %p47_p12  ;;  %p1921_p3 = por %p1878_p2, %p47_p12 }
  0x15   : > { %s35_s5 = ssub.s32 %s1814_s13, %s2352_s29  ;;  %p1616_p5 = scmp.lt.s32.totalorder %s1818_s14, 6 }
  0x16   : > { %p38_p7 = scmp.eq.s32.totalorder %s35_s5, 0  ;;  %s140_s6 = sand.u32 1, %s1806_s11  }
  0x17   : > { %s1569_s7 = sshll.u32 %s140_s6, 7  ;;  %s1593_s15 = sshll.u32 %s1814_s13, 7 }
  0x18   : > { %s1930_s8 = scalar_select %p38_p7, %s1806_s11, %s40_s30  }
  0x19   : > { %s152_s22 = scalar_lea.hbm %s2336_s0, %s1593_s15  ;;  %s144_s23 = scalar_lea.vmem [#allocation3], %s1569_s7 }
  0x1a   : > { %s155_s25 = sshll.u32 %s144_s23, 4  ;;  %s153_s18 = sshll.u32 %s152_s22, 4  ;;  %s156_s25 = int_to_ptr.vmem [resolvable:$true] %s155_s25  ;;  %s154_s18 = int_to_ptr.hbm [resolvable:$true] %s153_s18 }
  0x1b   : > { %p1608_p2 = pnand %p1616_p5, %p1915_p0  ;;  %s141_s26 = scalar_lea.sflag [#allocation4], %s140_s6 }
  0x1c   : > { %167 = sbr.rel (%p1897_p8) target bundleno = 376 (0x178), region = 28  ;;  %s1944_s30 = sand.u32 (!%p1897_p8), 1, %s1802_s10  }
  0x1d   : > { %1610 = dma.hbm_to_vmem [thread:$0]  (!%p1608_p2), %s154_s18, 2048, %s156_s25, %s141_s26, %s1821_s27, %s1821_s27, %s1822_s28  }
  0x1e   : > { %s1573_s5 = sshll.u32 (!%p1897_p8), %s1944_s30, 7  ;;  %s170_s7 = scalar_lea.sflag (!%p1897_p8), [#allocation4], %s1944_s30 }
  0x1f   : > { %s1948_s15 = scalar_lea.vmem (!%p1897_p8), [#allocation3], %s1573_s5 }
  0x21   : > { %1785 = dma.done.wait (%p1884_p4), %s170_s7, 2048  }
  0x22   : > { %1787 = vsyncadd (%p1884_p4), %s170_s7, 4294965248 }
  0x23   : > { %1789 = dma.done.wait (%p1874_p1), [#allocation7], 2048  }
  0x24   : > { %1791 = vsyncadd (%p1874_p1), [#allocation7], 4294965248  ;;  %vm210_vm0 = vcmask 261120   ;;  %v209_v0 = vld [vmem:[#allocation6 + $0x18] sm:$0xff]  ;;  %v208_v1 = vld [vmem:[#allocation6 + $0x10] sm:$0xff]  ;;  %s1575_s17 = sshll.u32 %s1944_s30, 5 }
  0x25   : > { %v207_v2 = vld [vmem:[#allocation6 + $0x8] sm:$0xff]  ;;  %v1958_v3 = vand.u32 4294901760, %v209_v0  ;;  %v1960_v4 = vand.u32 4294901760, %v208_v1  ;;  %v206_v6 = vld [vmem:[#allocation6] sm:$0xff]  ;;  %v514_v8 = vld [vmem:[#allocation6 + $0x38] sm:$0xff]  ;;  %s2286_s19 = scalar_lea.vmem [#allocation8], %s1575_s17 }
  0x26   : > { %v1962_v5 = vand.u32 4294901760, %v207_v2  ;;  %v202_v7 = vld [vmem:[%s1948_s15] sm:$0xff]  ;;  %v1965_v9 = vand.u32 4294901760, %v206_v6  ;;  %v1968_v11 = vand.u32 4294901760, %v514_v8  ;;  %v203_v12 = vld [vmem:[%s1948_s15 + $0x8] sm:$0xff]  ;;  %v513_v13 = vld [vmem:[#allocation6 + $0x30] sm:$0xff] }
  0x27   : > { %v212_v10 = vsel %vm210_vm0, %v202_v7, 0  ;;  %236 = vmatpush.msra.mxu0 %v1958_v3  ;;  %v289_v14 = vsub.f32 %v209_v0, %v1958_v3  ;;  %387 = vmatpush.msra.mxu3 %v1958_v3  ;;  %v1975_v15 = vsub.f32 %v208_v1, %v1960_v4  ;;  %v215_v20 = vsel %vm210_vm0, %v203_v12, 0  ;;  %v204_v38 = vld [vmem:[%s1948_s15 + $0x40] sm:$0xff]  ;;  %v512_v39 = vld [vmem:[#allocation6 + $0x28] sm:$0xff]  ;;  %s1594_s24 = sshll.u32 %s1810_s12, 5  ;;  %s1464_s6 = sshll.u32 %s2286_s19, 4  ;;  %s1465_s6 = int_to_ptr.vmem [resolvable:$true] %s1464_s6 }
  0x28   : > { %v1978_v16 = vsub.f32 %v207_v2, %v1962_v5  ;;  %v1980_v17 = vand.u32 4294901760, %v212_v10  ;;  %v1983_v18 = vsub.f32 %v206_v6, %v1965_v9  ;;  %v1986_v19 = vsub.f32 %v514_v8, %v1968_v11  ;;  %v205_v46 = vld [vmem:[%s1948_s15 + $0x48] sm:$0xff]  ;;  %v511_v47 = vld [vmem:[#allocation6 + $0x20] sm:$0xff]  ;;  %v1576_v6 = vld [vmem:[%s1948_s15 + $0x10] sm:$0xff]  ;;  %s1463_s3 = scalar_lea.hbm %s2338_s2, %s1594_s24  ;;  %s1450_s16 = scalar_lea.sflag [#allocation5], %s1944_s30 }
  0x29   : > { %v1989_v21 = vand.u32 4294901760, %v513_v13  ;;  %238 = vmatpush.msra.mxu0 %v1960_v4  ;;  %343 = vmatpush.msra.mxu2 %v289_v14  ;;  %v290_v22 = vand.u32 4294901760, %v289_v14  ;;  %v296_v24 = vand.u32 4294901760, %v1975_v15  ;;  %v1998_v28 = vand.u32 4294901760, %v215_v20  ;;  %s1466_s12 = sshll.u32 %s1463_s3, 4  ;;  %s1752_s18 = scalar_lea.hbm %s2338_s2, 192  ;;  %s1467_s12 = int_to_ptr.hbm [resolvable:$true] %s1466_s12 }
  0x2a   : > { %v244_v23 = vsub.f32 %v212_v10, %v1980_v17  ;;  %v302_v25 = vand.u32 4294901760, %v1978_v16  ;;  %389 = vmatpush.msra.mxu3 %v1960_v4  ;;  %v594_v26 = vand.u32 4294901760, %v1986_v19  ;;  %v308_v27 = vand.u32 4294901760, %v1983_v18  ;;  %s1746_s21 = sshra.s32 %s1467_s12, 4  ;;  %s1747_s21 = int_to_ptr.hbm [resolvable:$true] %s1746_s21 }
  0x2b   : > { %v2001_v29 = vsub.f32 %v513_v13, %v1989_v21  ;;  %240 = vmatpush.msra.mxu0 %v1962_v5  ;;  %346 = vmatpush.msra.mxu2 %v1975_v15  ;;  %v291_v30 = vsub.f32 %v289_v14, %v290_v22  ;;  %v297_v32 = vsub.f32 %v1975_v15, %v296_v24  ;;  %v218_v50 = vsel %vm210_vm0, %v204_v38, 0  ;;  %s1748_s22 = scalar_lea.hbm %s1747_s21, 32  ;;  %p1753_p9 = scmp.lt.s32.totalorder %s1747_s21, %s2338_s2 }
  0x2c   : > { %v245_v31 = vand.u32 4294901760, %v244_v23  ;;  %v303_v33 = vsub.f32 %v1978_v16, %v302_v25  ;;  %391 = vmatpush.msra.mxu3 %v1962_v5  ;;  %v595_v34 = vsub.f32 %v1986_v19, %v594_v26  ;;  %v309_v35 = vsub.f32 %v1983_v18, %v308_v27  ;;  %p1749_p1 = scmp.ne.s32.totalorder %s1747_s21, %s1748_s22  ;;  %p1754_p10 = scmp.lt.s32.totalorder %s1752_s18, %s1748_s22 }
  0x2d   : > { %v252_v36 = vsub.f32 %v215_v20, %v1998_v28  ;;  %v600_v37 = vand.u32 4294901760, %v2001_v29  ;;  %242 = vmatpush.msra.mxu0 %v1965_v9  ;;  %v292_v40 = vand.u32 4294901760, %v291_v30  ;;  %349 = vmatpush.msra.mxu2 %v1978_v16  ;;  %v298_v42 = vand.u32 4294901760, %v297_v32  ;;  %v1577_v16 = vld [vmem:[%s1948_s15 + $0x18] sm:$0xff] }
  0x2e   : > { %v246_v41 = vsub.f32 %v244_v23, %v245_v31  ;;  %393 = vmatpush.msra.mxu3 %v1965_v9  ;;  %v596_v43 = vand.u32 4294901760, %v595_v34  ;;  %v304_v49 = vand.u32 4294901760, %v303_v33  ;;  %v2026_v51 = vand.u32 4294901760, %v512_v39  ;;  %v826_v33 = vld [vmem:[#allocation6 + $0x58] sm:$0xff]  ;;  %p1750_p4 = pnand %p1749_p1, %p1921_p3  ;;  %p1755_p11 = por %p1754_p10, %p1753_p9 }
  0x2f   : > { %434 = vmatpush.msrb.mxu0 %v290_v22  ;;  %v253_v44 = vand.u32 4294901760, %v252_v36  ;;  %v601_v45 = vsub.f32 %v2001_v29, %v600_v37  ;;  %293 = vmatpush.msra.mxu1 %v292_v40  ;;  %v310_v52 = vand.u32 4294901760, %v309_v35  ;;  %v2028_v54 = vand.u32 4294901760, %v218_v50  ;;  %v1578_v22 = vld [vmem:[%s1948_s15 + $0x50] sm:$0xff] }
  0x30   : > { %v247_v48 = vand.u32 4294901760, %v246_v41  ;;  %352 = vmatpush.msra.mxu2 %v1983_v18  ;;  %397 = vmatmul.f32.vlgmr.msra.gmra.mxu3 %v245_v31  ;;  %v605_v56 = vsub.f32 %v512_v39, %v2026_v51  ;;  %v221_v57 = vsel %vm210_vm0, %v205_v46, 0  ;;  %v2032_v58 = vand.u32 4294901760, %v511_v47  ;;  %p1751_p8 = pneg %p1750_p4 }
  0x31   : > { %355 = vmatmul.f32.vlgmr.msra.gmra.mxu2 %v244_v23  ;;  %v602_v53 = vand.u32 4294901760, %v601_v45  ;;  %299 = vmatpush.msra.mxu1 %v298_v42  ;;  %v254_v55 = vsub.f32 %v252_v36, %v253_v44  ;;  %v260_v59 = vsub.f32 %v218_v50, %v2028_v54  ;;  %v2038_v62 = vand.u32 4294901760, %v221_v57 }
  0x32   : > { %248 = vmatmul.f32.vlgmr.msra.gmra.mxu0 %v247_v48  ;;  %540 = vmatpush.msrb.mxu2 %v1968_v11  ;;  %v606_v60 = vand.u32 4294901760, %v605_v56  ;;  %v611_v61 = vsub.f32 %v511_v47, %v2032_v58  ;;  %v516_v14 = vsel %vm210_vm0, %v1576_v6, 0  ;;  %v519_v18 = vsel %vm210_vm0, %v1577_v16, 0  ;;  %v1581_v16 = vld [vmem:[%s1948_s15 + $0x28] sm:$0xff]  ;;  %p1756_p12 = pnand %p1755_p11, %p1751_p8 }
  0x33   : > { %597 = vmatpush.msrb.mxu3 %v596_v43  ;;  %305 = vmatpush.msra.mxu1 %v304_v49  ;;  %v255_v63 = vand.u32 4294901760, %v254_v55  ;;  %v261_v0 = vand.u32 4294901760, %v260_v59  ;;  %v268_v12 = vsub.f32 %v221_v57, %v2038_v62  ;;  %v2100_v34 = vand.u32 4294901760, %v826_v33  ;;  %v825_v43 = vld [vmem:[#allocation6 + $0x50] sm:$0xff] }
  0x34   : > { %438 = vmatpush.msrb.mxu0 %v296_v24  ;;  %542 = vmatpush.msrb.mxu2 %v1989_v21  ;;  %v607_v1 = vsub.f32 %v605_v56, %v606_v60  ;;  %v612_v2 = vand.u32 4294901760, %v611_v61  ;;  %v522_v24 = vsel %vm210_vm0, %v1578_v22, 0  ;;  %v853_v45 = vand.u32 4294901760, %v825_v43 }
  0x35   : > { %603 = vmatpush.msrb.mxu3 %v602_v53  ;;  %311 = vmatpush.msra.mxu1 %v310_v52  ;;  %v262_v10 = vsub.f32 %v260_v59, %v261_v0  ;;  %v269_v15 = vand.u32 4294901760, %v268_v12  ;;  %v905_v38 = vsub.f32 %v826_v33, %v2100_v34 }
  0x36   : > { %442 = vmatpush.msrb.mxu0 %v302_v25  ;;  %313 = vmatmul.f32.vlgmr.msra.gmra.mxu1 %v1980_v17  ;;  %v608_v7 = vand.u32 4294901760, %v607_v1  ;;  %v613_v8 = vsub.f32 %v611_v61, %v612_v2  ;;  %v911_v47 = vsub.f32 %v825_v43, %v853_v45 }
  0x37   : > { %544 = vmatpush.msrb.mxu2 %v2026_v51  ;;  %477 = vmatpush.msrb.mxu1 %v1958_v3  ;;  %v2053_v3 = vand.u32 4294901760, %v516_v14  ;;  %v906_v39 = vand.u32 4294901760, %v905_v38 }
  0x38   : > { %446 = vmatpush.msrb.mxu0 %v308_v27  ;;  %403 = vmatmul.f32.gmra.mxu3 %v253_v44  ;;  %v614_v13 = vand.u32 4294901760, %v613_v8  ;;  %v2087_v27 = vand.u32 4294901760, %v522_v24  ;;  %v912_v48 = vand.u32 4294901760, %v911_v47 }
  0x39   : > { %360 = vmatmul.f32.gmra.mxu2 %v252_v36  ;;  %479 = vmatpush.msrb.mxu1 %v1960_v4  ;;  %v263_v4 = vand.u32 4294901760, %v262_v10  ;;  %v907_v42 = vsub.f32 %v905_v38, %v906_v39  ;;  %v1137_v10 = vld [vmem:[#allocation6 + $0x70] sm:$0xff] }
  0x3a   : > { %256 = vmatmul.f32.gmra.mxu0 %v255_v63  ;;  %609 = vmatpush.msrb.mxu3 %v608_v7  ;;  %v2096_v31 = vsub.f32 %v522_v24, %v2087_v27  ;;  %v913_v50 = vsub.f32 %v911_v47, %v912_v48  ;;  %v1580_v7 = vld [vmem:[%s1948_s15 + $0x20] sm:$0xff] }
  0x3b   : > { %546 = vmatpush.msrb.mxu2 %v2032_v58  ;;  %481 = vmatpush.msrb.mxu1 %v1962_v5  ;;  %v2065_v5 = vsub.f32 %v516_v14, %v2053_v3  ;;  %v908_v44 = vand.u32 4294901760, %v907_v42  ;;  %v2149_v14 = vand.u32 4294901760, %v1137_v10 }
  0x3c   : > { %615 = vmatpush.msrb.mxu3 %v614_v13  ;;  %647 = vmatpush.msra.mxu0 %v1986_v19  ;;  %v2072_v19 = vand.u32 4294901760, %v519_v18  ;;  %v565_v36 = vand.u32 4294901760, %v2096_v31  ;;  %v914_v52 = vand.u32 4294901760, %v913_v50 }
  0x3d   : > { %738 = vmatpush.msra.mxu2 %v594_v26  ;;  %483 = vmatpush.msrb.mxu1 %v1965_v9  ;;  %v270_v9 = vsub.f32 %v268_v12, %v269_v15 }
  0x3e   : > { %781 = vmatpush.msra.mxu3 %v1968_v11  ;;  %317 = vmatmul.f32.gmra.mxu1 %v1998_v28  ;;  %v2083_v23 = vsub.f32 %v519_v18, %v2072_v19  ;;  %v566_v40 = vsub.f32 %v2096_v31, %v565_v36  ;;  %v1136_v18 = vld [vmem:[#allocation6 + $0x68] sm:$0xff] }
  0x3f   : > { %742 = vmatpush.msra.mxu2 %v600_v37  ;;  %691 = vmatpush.msra.mxu1 %v1968_v11  ;;  %v549_v11 = vand.u32 4294901760, %v2065_v5  ;;  %v271_v20 = vand.u32 4294901760, %v270_v9 }
  0x40   : > { %650 = vmatpush.msra.mxu0 %v2001_v29  ;;  %409 = vmatmul.f32.gmra.mxu3 %v261_v0  ;;  %v557_v26 = vand.u32 4294901760, %v2083_v23  ;;  %v1579_v29 = vld [vmem:[%s1948_s15 + $0x58] sm:$0xff]  ;;  %v567_v46 = vand.u32 4294901760, %v566_v40  ;;  %v1583_v40 = vld [vmem:[%s1948_s15 + $0x68] sm:$0xff] }
  0x41   : > { %365 = vmatmul.f32.gmra.mxu2 %v260_v59  ;;  %783 = vmatpush.msra.mxu3 %v1989_v21  ;;  %v525_v32 = vsel %vm210_vm0, %v1579_v29, 0  ;;  %v1138_v0 = vld [vmem:[#allocation6 + $0x78] sm:$0xff] }
  0x42   : > { %264 = vmatmul.f32.gmra.mxu0 %v263_v4  ;;  %693 = vmatpush.msra.mxu1 %v1989_v21  ;;  %v550_v21 = vsub.f32 %v2065_v5, %v549_v11  ;;  %v558_v30 = vsub.f32 %v2083_v23, %v557_v26  ;;  %v2103_v37 = vand.u32 4294901760, %v525_v32 }
  0x43   : > { %746 = vmatpush.msra.mxu2 %v606_v60  ;;  %653 = vmatpush.msra.mxu0 %v605_v56 }
  0x44   : > { %785 = vmatpush.msra.mxu3 %v2026_v51  ;;  %695 = vmatpush.msra.mxu1 %v2026_v51  ;;  %v551_v25 = vand.u32 4294901760, %v550_v21  ;;  %v559_v35 = vand.u32 4294901760, %v558_v30  ;;  %v2114_v41 = vsub.f32 %v525_v32, %v2103_v37  ;;  %v824_v51 = vld [vmem:[#allocation6 + $0x48] sm:$0xff] }
  0x45   : > { %750 = vmatpush.msra.mxu2 %v612_v2  ;;  %656 = vmatpush.msra.mxu0 %v611_v61  ;;  %v855_v53 = vand.u32 4294901760, %v824_v51  ;;  %v2131_v2 = vand.u32 4294901760, %v1138_v0 }
  0x46   : > { %787 = vmatpush.msra.mxu3 %v2032_v58  ;;  %321 = vmatmul.f32.gmra.mxu1 %v2028_v54 }
  0x47   : > { %697 = vmatpush.msra.mxu1 %v2032_v58  ;;  %v917_v56 = vsub.f32 %v824_v51, %v855_v53  ;;  %v823_v58 = vld [vmem:[#allocation6 + $0x40] sm:$0xff] }
  0x48   : > { %415 = vmatmul.f32.gmra.mxu3 %v269_v15  ;;  %v857_v60 = vand.u32 4294901760, %v823_v58 }
  0x49   : > { %370 = vmatmul.f32.gmra.mxu2 %v268_v12  ;;  %v828_v12 = vsel %vm210_vm0, %v1580_v7, 0  ;;  %v1587_v7 = vld [vmem:[%s1948_s15 + $0x78] sm:$0xff] }
  0x4a   : > { %272 = vmatmul.f32.gmra.mxu0 %v271_v20  ;;  %v923_v61 = vsub.f32 %v823_v58, %v857_v60  ;;  %v2153_v4 = vand.u32 4294901760, %v828_v12  ;;  %v1167_v20 = vand.u32 4294901760, %v1136_v18 }
  0x4c   : > { %v860_v9 = vsub.f32 %v828_v12, %v2153_v4  ;;  %v1229_v22 = vsub.f32 %v1136_v18, %v1167_v20  ;;  %v1149_v12 = vsel %vm210_vm0, %v1587_v7, 0 }
  0x4e   : > { %325 = vmatmul.f32.gmra.mxu1 %v2038_v62  ;;  %v861_v21 = vand.u32 4294901760, %v860_v9  ;;  %v1230_v24 = vand.u32 4294901760, %v1229_v22 }
  0x50   : > { %617 = vmatmul.f32.vlgmr.msrb.gmra.mxu3 %v2053_v3  ;;  %v862_v30 = vsub.f32 %v860_v9, %v861_v21 }
  0x51   : > { %552 = vmatmul.f32.vlgmr.msrb.gmra.mxu2 %v551_v25  ;;  %1003 = vmatpush.msrb.mxu3 %v2100_v34  ;;  %v1582_v25 = vld [vmem:[%s1948_s15 + $0x60] sm:$0xff] }
  0x52   : > { %448 = vmatmul.f32.vlgmr.msrb.gmra.mxu0 %v1980_v17  ;;  %959 = vmatpush.msrb.mxu2 %v905_v38  ;;  %v834_v33 = vsel %vm210_vm0, %v1582_v25, 0 }
  0x53   : > { %852 = vmatpush.msrb.mxu0 %v2100_v34  ;;  %1005 = vmatpush.msrb.mxu3 %v853_v45 }
  0x54   : > { %962 = vmatpush.msrb.mxu2 %v911_v47  ;;  %v1584_v47 = vld [vmem:[%s1948_s15 + $0x30] sm:$0xff] }
  0x55   : > { %854 = vmatpush.msrb.mxu0 %v853_v45  ;;  %1007 = vmatpush.msrb.mxu3 %v855_v53  ;;  %v1140_v50 = vsel %vm210_vm0, %v1584_v47, 0 }
  0x56   : > { %485 = vmatmul.f32.vlgmr.msrb.gmra.mxu1 %v1980_v17  ;;  %v573_v17 = vand.u32 4294901760, %v2114_v41  ;;  %965 = vmatpush.msrb.mxu2 %v917_v56  ;;  %v2193_v51 = vand.u32 4294901760, %v1140_v50 }
  0x57   : > { %909 = vmatpush.msrb.mxu1 %v908_v44  ;;  %856 = vmatpush.msrb.mxu0 %v855_v53 }
  0x58   : > { %621 = vmatmul.f32.gmra.mxu3 %v2072_v19  ;;  %v574_v49 = vsub.f32 %v2114_v41, %v573_v17  ;;  %968 = vmatpush.msrb.mxu2 %v923_v61 }
  0x59   : > { %560 = vmatmul.f32.gmra.mxu2 %v559_v35  ;;  %915 = vmatpush.msrb.mxu1 %v914_v52 }
  0x5a   : > { %452 = vmatmul.f32.gmra.mxu0 %v1998_v28  ;;  %v575_v55 = vand.u32 4294901760, %v574_v49  ;;  %1009 = vmatpush.msrb.mxu3 %v857_v60 }
  0x5b   : > { %858 = vmatpush.msrb.mxu0 %v857_v60 }
  0x5e   : > { %489 = vmatmul.f32.gmra.mxu1 %v1998_v28  ;;  %v918_v28 = vand.u32 4294901760, %v917_v56 }
  0x60   : > { %625 = vmatmul.f32.gmra.mxu3 %v2087_v27  ;;  %v919_v57 = vsub.f32 %v917_v56, %v918_v28  ;;  %v2198_v56 = vsub.f32 %v1140_v50, %v2193_v51 }
  0x61   : > { %568 = vmatmul.f32.gmra.mxu2 %v567_v46 }
  0x62   : > { %456 = vmatmul.f32.gmra.mxu0 %v2028_v54  ;;  %v920_v59 = vand.u32 4294901760, %v919_v57  ;;  %v1173_v58 = vand.u32 4294901760, %v2198_v56 }
  0x64   : > { %921 = vmatpush.msrb.mxu1 %v920_v59 }
  0x66   : > { %493 = vmatmul.f32.gmra.mxu1 %v2028_v54  ;;  %v924_v54 = vand.u32 4294901760, %v923_v61 }
  0x68   : > { %629 = vmatmul.f32.gmra.mxu3 %v2103_v37  ;;  %v925_v63 = vsub.f32 %v923_v61, %v924_v54  ;;  %v1586_v61 = vld [vmem:[%s1948_s15 + $0x70] sm:$0xff] }
  0x69   : > { %576 = vmatmul.f32.gmra.mxu2 %v575_v55  ;;  %v1585_v55 = vld [vmem:[%s1948_s15 + $0x38] sm:$0xff] }
  0x6a   : > { %460 = vmatmul.f32.gmra.mxu0 %v2038_v62  ;;  %v926_v1 = vand.u32 4294901760, %v925_v63  ;;  %v1143_v57 = vsel %vm210_vm0, %v1585_v55, 0 }
  0x6b   : > { %v2202_v59 = vand.u32 4294901760, %v1143_v57 }
  0x6c   : > { %927 = vmatpush.msrb.mxu1 %v926_v1 }
  0x6d   : > { %v2210_v63 = vsub.f32 %v1143_v57, %v2202_v59 }
  0x6e   : > { %497 = vmatmul.f32.gmra.mxu1 %v2038_v62  ;;  %v2135_v62 = vsub.f32 %v1138_v0, %v2131_v2  ;;  %v1146_v0 = vsel %vm210_vm0, %v1586_v61, 0 }
  0x70   : > { %789 = vmatmul.f32.vlgmr.msra.gmra.mxu3 %v2053_v3  ;;  %v1218_v6 = vand.u32 4294901760, %v2135_v62 }
  0x71   : > { %752 = vmatmul.f32.vlgmr.msra.gmra.mxu2 %v2053_v3  ;;  %v1223_v3 = vsub.f32 %v1137_v10, %v2149_v14 }
  0x72   : > { %659 = vmatmul.f32.vlgmr.msra.gmra.mxu0 %v2065_v5  ;;  %1164 = vmatpush.msra.mxu2 %v2131_v2  ;;  %v1219_v8 = vsub.f32 %v2135_v62, %v1218_v6 }
  0x73   : > { %1050 = vmatpush.msra.mxu0 %v906_v39  ;;  %v1224_v15 = vand.u32 4294901760, %v1223_v3  ;;  %v2173_v39 = vand.u32 4294901760, %v834_v33 }
  0x74   : > { %v1220_v13 = vand.u32 4294901760, %v1219_v8  ;;  %1166 = vmatpush.msra.mxu2 %v2149_v14 }
  0x75   : > { %1054 = vmatpush.msra.mxu0 %v912_v48  ;;  %v1225_v5 = vsub.f32 %v1223_v3, %v1224_v15  ;;  %v876_v44 = vsub.f32 %v834_v33, %v2173_v39 }
  0x76   : > { %701 = vmatmul.f32.vlgmr.msra.gmra.mxu1 %v549_v11  ;;  %1221 = vmatpush.msra.mxu3 %v1220_v13  ;;  %v831_v11 = vsel %vm210_vm0, %v1581_v16, 0 }
  0x77   : > { %1093 = vmatpush.msra.mxu1 %v2100_v34  ;;  %1058 = vmatpush.msra.mxu0 %v918_v28  ;;  %v877_v46 = vand.u32 4294901760, %v876_v44 }
  0x78   : > { %793 = vmatmul.f32.gmra.mxu3 %v2072_v19  ;;  %1168 = vmatpush.msra.mxu2 %v1167_v20 }
  0x79   : > { %756 = vmatmul.f32.gmra.mxu2 %v2072_v19  ;;  %1095 = vmatpush.msra.mxu1 %v853_v45  ;;  %v1226_v19 = vand.u32 4294901760, %v1225_v5  ;;  %v837_v45 = vsel %vm210_vm0, %v1583_v40, 0  ;;  %v878_v48 = vsub.f32 %v876_v44, %v877_v46 }
  0x7a   : > { %664 = vmatmul.f32.gmra.mxu0 %v2083_v23  ;;  %v2163_v23 = vand.u32 4294901760, %v831_v11 }
  0x7b   : > { %1062 = vmatpush.msra.mxu0 %v924_v54  ;;  %1097 = vmatpush.msra.mxu1 %v855_v53  ;;  %v879_v52 = vand.u32 4294901760, %v878_v48  ;;  %v1174_v54 = vsub.f32 %v2198_v56, %v1173_v58 }
  0x7c   : > { %1227 = vmatpush.msra.mxu3 %v1226_v19  ;;  %v868_v32 = vsub.f32 %v831_v11, %v2163_v23 }
  0x7d   : > { %1099 = vmatpush.msra.mxu1 %v857_v60  ;;  %v1175_v1 = vand.u32 4294901760, %v1174_v54 }
  0x7e   : > { %707 = vmatmul.f32.gmra.mxu1 %v557_v26  ;;  %v1135_v26 = vld [vmem:[#allocation6 + $0x60] sm:$0xff]  ;;  %v869_v38 = vand.u32 4294901760, %v868_v32 }
  0x7f   : > { %v1169_v29 = vand.u32 4294901760, %v1135_v26 }
  0x80   : > { %797 = vmatmul.f32.gmra.mxu3 %v2087_v27  ;;  %v870_v43 = vsub.f32 %v868_v32, %v869_v38 }
  0x81   : > { %760 = vmatmul.f32.gmra.mxu2 %v2087_v27  ;;  %v1231_v27 = vsub.f32 %v1229_v22, %v1230_v24 }
  0x82   : > { %669 = vmatmul.f32.gmra.mxu0 %v2096_v31  ;;  %1170 = vmatpush.msra.mxu2 %v1169_v29  ;;  %v1235_v31 = vsub.f32 %v1135_v26, %v1169_v29 }
  0x83   : > { %v1232_v34 = vand.u32 4294901760, %v1231_v27 }
  0x84   : > { %v1236_v35 = vand.u32 4294901760, %v1235_v31 }
  0x85   : > { %1233 = vmatpush.msra.mxu3 %v1232_v34 }
  0x86   : > { %713 = vmatmul.f32.gmra.mxu1 %v565_v36  ;;  %v863_v36 = vand.u32 4294901760, %v862_v30 }
  0x88   : > { %801 = vmatmul.f32.gmra.mxu3 %v2103_v37 }
  0x89   : > { %764 = vmatmul.f32.gmra.mxu2 %v2103_v37  ;;  %v1237_v37 = vsub.f32 %v1235_v31, %v1236_v35 }
  0x8a   : > { %674 = vmatmul.f32.gmra.mxu0 %v2114_v41  ;;  %v871_v41 = vand.u32 4294901760, %v870_v43 }
  0x8b   : > { %v1238_v42 = vand.u32 4294901760, %v1237_v37 }
  0x8d   : > { %1239 = vmatpush.msra.mxu3 %v1238_v42 }
  0x8e   : > { %719 = vmatmul.f32.gmra.mxu1 %v573_v17  ;;  %v2184_v17 = vand.u32 4294901760, %v837_v45 }
  0x90   : > { %1013 = vmatmul.f32.vlgmr.msrb.gmra.mxu3 %v861_v21  ;;  %v884_v49 = vsub.f32 %v837_v45, %v2184_v17 }
  0x91   : > { %971 = vmatmul.f32.vlgmr.msrb.gmra.mxu2 %v860_v9  ;;  %1405 = vmatpush.msrb.mxu3 %v2131_v2  ;;  %v2228_v9 = vand.u32 4294901760, %v1149_v12 }
  0x92   : > { %864 = vmatmul.f32.vlgmr.msrb.gmra.mxu0 %v863_v36  ;;  %1362 = vmatpush.msrb.mxu2 %v1218_v6  ;;  %v885_v53 = vand.u32 4294901760, %v884_v49 }
  0x93   : > { %1271 = vmatpush.msrb.mxu0 %v2135_v62  ;;  %1407 = vmatpush.msrb.mxu3 %v2149_v14  ;;  %v2214_v62 = vand.u32 4294901760, %v1146_v0 }
  0x94   : > { %1366 = vmatpush.msrb.mxu2 %v1224_v15  ;;  %v886_v28 = vsub.f32 %v884_v49, %v885_v53 }
  0x95   : > { %1274 = vmatpush.msrb.mxu0 %v1223_v3  ;;  %1409 = vmatpush.msrb.mxu3 %v1167_v20  ;;  %v2223_v10 = vsub.f32 %v1146_v0, %v2214_v62 }
  0x96   : > { %1370 = vmatpush.msrb.mxu2 %v1230_v24  ;;  %929 = vmatmul.f32.vlgmr.msrb.gmra.mxu1 %v2153_v4  ;;  %v887_v60 = vand.u32 4294901760, %v886_v28 }
  0x97   : > { %1277 = vmatpush.msrb.mxu0 %v1229_v22  ;;  %1315 = vmatpush.msrb.mxu1 %v2131_v2  ;;  %v1181_v2 = vand.u32 4294901760, %v2210_v63  ;;  %v1189_v5 = vand.u32 4294901760, %v2223_v10  ;;  %v2236_v22 = vsub.f32 %v1149_v12, %v2228_v9 }
  0x98   : > { %1019 = vmatmul.f32.gmra.mxu3 %v869_v38  ;;  %1374 = vmatpush.msrb.mxu2 %v1236_v35 }
  0x99   : > { %976 = vmatmul.f32.gmra.mxu2 %v868_v32  ;;  %1317 = vmatpush.msrb.mxu1 %v2149_v14  ;;  %v1182_v8 = vsub.f32 %v2210_v63, %v1181_v2 }
  0x9a   : > { %872 = vmatmul.f32.gmra.mxu0 %v871_v41  ;;  %1411 = vmatpush.msrb.mxu3 %v1169_v29 }
  0x9b   : > { %1280 = vmatpush.msrb.mxu0 %v1235_v31  ;;  %1319 = vmatpush.msrb.mxu1 %v1167_v20  ;;  %v1183_v16 = vand.u32 4294901760, %v1182_v8  ;;  %v1190_v20 = vsub.f32 %v2223_v10, %v1189_v5 }
  0x9d   : > { %1321 = vmatpush.msrb.mxu1 %v1169_v29  ;;  %v1191_v27 = vand.u32 4294901760, %v1190_v20 }
  0x9e   : > { %933 = vmatmul.f32.gmra.mxu1 %v2163_v23 }
  0xa0   : > { %1025 = vmatmul.f32.gmra.mxu3 %v877_v46 }
  0xa1   : > { %981 = vmatmul.f32.gmra.mxu2 %v876_v44 }
  0xa2   : > { %880 = vmatmul.f32.gmra.mxu0 %v879_v52 }
  0xa6   : > { %937 = vmatmul.f32.gmra.mxu1 %v2173_v39 }
  0xa8   : > { %1031 = vmatmul.f32.gmra.mxu3 %v885_v53 }
  0xa9   : > { %986 = vmatmul.f32.gmra.mxu2 %v884_v49 }
  0xaa   : > { %888 = vmatmul.f32.gmra.mxu0 %v887_v60 }
  0xae   : > { %941 = vmatmul.f32.gmra.mxu1 %v2184_v17 }
  0xaf   : > { %v249_v6 = vpop.f32.mrf.mxu0 }
  0xb0   : > { %1241 = vmatmul.f32.vlgmr.msra.gmra.mxu3 %v2193_v51 }
  0xb1   : > { %1176 = vmatmul.f32.vlgmr.msra.gmra.mxu2 %v1175_v1 }
  0xb2   : > { %1064 = vmatmul.f32.vlgmr.msra.gmra.mxu0 %v2153_v4 }
  0xb3   : > { %v314_v13 = vpop.f32.mrf.mxu1  ;;  %v398_v15 = vpop.f32.mrf.mxu3 }
  0xb4   : > { %v356_v14 = vpop.f32.mrf.mxu2  ;;  %v315_v3 = vadd.f32 %v314_v13, %v249_v6 }
  0xb6   : > { %v357_v11 = vadd.f32 %v356_v14, %v315_v3  ;;  %1101 = vmatmul.f32.vlgmr.msra.gmra.mxu1 %v2153_v4  ;;  %v1197_v4 = vand.u32 4294901760, %v2236_v22 }
  0xb7   : > { %v257_v18 = vpop.f32.mrf.mxu0 }
  0xb8   : > { %v399_v19 = vadd.f32 %v398_v15, %v357_v11  ;;  %1245 = vmatmul.f32.gmra.mxu3 %v2202_v59  ;;  %v1198_v33 = vsub.f32 %v2236_v22, %v1197_v4 }
  0xb9   : > { %1184 = vmatmul.f32.gmra.mxu2 %v1183_v16 }
  0xba   : > { %1068 = vmatmul.f32.gmra.mxu0 %v2163_v23  ;;  %v1199_v38 = vand.u32 4294901760, %v1198_v33 }
  0xbb   : > { %v318_v21 = vpop.f32.mrf.mxu1  ;;  %v404_v26 = vpop.f32.mrf.mxu3 }
  0xbc   : > { %v361_v24 = vpop.f32.mrf.mxu2  ;;  %v319_v25 = vadd.f32 %v318_v21, %v257_v18 }
  0xbe   : > { %v362_v30 = vadd.f32 %v361_v24, %v319_v25  ;;  %1105 = vmatmul.f32.gmra.mxu1 %v2163_v23 }
  0xbf   : > { %v265_v29 = vpop.f32.mrf.mxu0 }
  0xc0   : > { %v405_v32 = vadd.f32 %v404_v26, %v362_v30  ;;  %1249 = vmatmul.f32.gmra.mxu3 %v2214_v62 }
  0xc1   : > { %1192 = vmatmul.f32.gmra.mxu2 %v1191_v27 }
  0xc2   : > { %1072 = vmatmul.f32.gmra.mxu0 %v2173_v39 }
  0xc3   : > { %v322_v34 = vpop.f32.mrf.mxu1  ;;  %v410_v36 = vpop.f32.mrf.mxu3 }
  0xc4   : > { %v366_v31 = vpop.f32.mrf.mxu2  ;;  %v323_v35 = vadd.f32 %v322_v34, %v265_v29 }
  0xc6   : > { %v367_v40 = vadd.f32 %v366_v31, %v323_v35  ;;  %1109 = vmatmul.f32.gmra.mxu1 %v2173_v39 }
  0xc7   : > { %v273_v37 = vpop.f32.mrf.mxu0 }
  0xc8   : > { %v411_v23 = vadd.f32 %v410_v36, %v367_v40  ;;  %1253 = vmatmul.f32.gmra.mxu3 %v2228_v9 }
  0xc9   : > { %1200 = vmatmul.f32.gmra.mxu2 %v1199_v38 }
  0xca   : > { %1076 = vmatmul.f32.gmra.mxu0 %v2184_v17 }
  0xcb   : > { %v326_v42 = vpop.f32.mrf.mxu1  ;;  %v416_v45 = vpop.f32.mrf.mxu3 }
  0xcc   : > { %v371_v43 = vpop.f32.mrf.mxu2  ;;  %v327_v44 = vadd.f32 %v326_v42, %v273_v37 }
  0xce   : > { %v372_v41 = vadd.f32 %v371_v43, %v327_v44  ;;  %1113 = vmatmul.f32.gmra.mxu1 %v2184_v17 }
  0xcf   : > { %v449_v46 = vpop.f32.mrf.mxu0 }
  0xd0   : > { %v450_v47 = vadd.f32 %v449_v46, %v399_v19  ;;  %v417_v48 = vadd.f32 %v416_v45, %v372_v41  ;;  %1413 = vmatmul.f32.vlgmr.msrb.gmra.mxu3 %v2193_v51 }
  0xd1   : > { %1376 = vmatmul.f32.vlgmr.msrb.gmra.mxu2 %v2193_v51 }
  0xd2   : > { %1283 = vmatmul.f32.vlgmr.msrb.gmra.mxu0 %v2198_v56 }
  0xd3   : > { %v486_v39 = vpop.f32.mrf.mxu1  ;;  %v618_v52 = vpop.f32.mrf.mxu3 }
  0xd4   : > { %v553_v49 = vpop.f32.mrf.mxu2  ;;  %v487_v50 = vadd.f32 %v486_v39, %v450_v47 }
  0xd5   : > { %v619_v53 = vadd.f32 %v618_v52, %v553_v49 }
  0xd6   : > { %1325 = vmatmul.f32.vlgmr.msrb.gmra.mxu1 %v1173_v58 }
  0xd7   : > { %v453_v55 = vpop.f32.mrf.mxu0 }
  0xd8   : > { %v454_v28 = vadd.f32 %v453_v55, %v405_v32  ;;  %1417 = vmatmul.f32.gmra.mxu3 %v2202_v59 }
  0xd9   : > { %1380 = vmatmul.f32.gmra.mxu2 %v2202_v59 }
  0xda   : > { %1288 = vmatmul.f32.gmra.mxu0 %v2210_v63 }
  0xdb   : > { %v490_v17 = vpop.f32.mrf.mxu1  ;;  %v622_v60 = vpop.f32.mrf.mxu3 }
  0xdc   : > { %v561_v51 = vpop.f32.mrf.mxu2  ;;  %v491_v57 = vadd.f32 %v490_v17, %v454_v28 }
  0xdd   : > { %v623_v61 = vadd.f32 %v622_v60, %v561_v51 }
  0xde   : > { %1331 = vmatmul.f32.gmra.mxu1 %v1181_v2 }
  0xdf   : > { %v457_v54 = vpop.f32.mrf.mxu0 }
  0xe0   : > { %v458_v0 = vadd.f32 %v457_v54, %v411_v23  ;;  %1421 = vmatmul.f32.gmra.mxu3 %v2214_v62 }
  0xe1   : > { %1384 = vmatmul.f32.gmra.mxu2 %v2214_v62 }
  0xe2   : > { %1293 = vmatmul.f32.gmra.mxu0 %v2223_v10 }
  0xe3   : > { %v494_v56 = vpop.f32.mrf.mxu1  ;;  %v626_v1 = vpop.f32.mrf.mxu3 }
  0xe4   : > { %v569_v58 = vpop.f32.mrf.mxu2  ;;  %v495_v59 = vadd.f32 %v494_v56, %v458_v0 }
  0xe5   : > { %v627_v6 = vadd.f32 %v626_v1, %v569_v58 }
  0xe6   : > { %1337 = vmatmul.f32.gmra.mxu1 %v1189_v5 }
  0xe7   : > { %v461_v7 = vpop.f32.mrf.mxu0 }
  0xe8   : > { %v462_v8 = vadd.f32 %v461_v7, %v417_v48  ;;  %1425 = vmatmul.f32.gmra.mxu3 %v2228_v9 }
  0xe9   : > { %1388 = vmatmul.f32.gmra.mxu2 %v2228_v9 }
  0xea   : > { %1298 = vmatmul.f32.gmra.mxu0 %v2236_v22 }
  0xeb   : > { %v498_v63 = vpop.f32.mrf.mxu1  ;;  %v630_v12 = vpop.f32.mrf.mxu3 }
  0xec   : > { %v577_v2 = vpop.f32.mrf.mxu2  ;;  %v499_v62 = vadd.f32 %v498_v63, %v462_v8 }
  0xed   : > { %v631_v13 = vadd.f32 %v630_v12, %v577_v2 }
  0xee   : > { %1343 = vmatmul.f32.gmra.mxu1 %v1197_v4 }
  0xef   : > { %v660_v14 = vpop.f32.mrf.mxu0 }
  0xf0   : > { %v661_v3 = vadd.f32 %v660_v14, %v619_v53 }
  0xf3   : > { %v702_v15 = vpop.f32.mrf.mxu1  ;;  %v790_v5 = vpop.f32.mrf.mxu3 }
  0xf4   : > { %v753_v10 = vpop.f32.mrf.mxu2  ;;  %v703_v16 = vadd.f32 %v702_v15, %v661_v3 }
  0xf6   : > { %v754_v11 = vadd.f32 %v753_v10, %v703_v16 }
  0xf7   : > { %v665_v18 = vpop.f32.mrf.mxu0 }
  0xf8   : > { %v666_v19 = vadd.f32 %v665_v18, %v623_v61  ;;  %v791_v9 = vadd.f32 %v790_v5, %v754_v11 }
  0xfa   : > { %v2270_v20 = vadd.f32 %v791_v9, %v487_v50 }
  0xfb   : > { %v708_v21 = vpop.f32.mrf.mxu1  ;;  %v794_v26 = vpop.f32.mrf.mxu3 }
  0xfc   : > { %v757_v24 = vpop.f32.mrf.mxu2  ;;  %v709_v25 = vadd.f32 %v708_v21, %v666_v19 }
  0xfe   : > { %v758_v29 = vadd.f32 %v757_v24, %v709_v25 }
  0xff   : > { %v670_v27 = vpop.f32.mrf.mxu0 }
 0x100   : > { %v671_v30 = vadd.f32 %v670_v27, %v627_v6  ;;  %v795_v22 = vadd.f32 %v794_v26, %v758_v29 }
 0x102   : > { %v2272_v4 = vadd.f32 %v795_v22, %v491_v57 }
 0x103   : > { %v714_v32 = vpop.f32.mrf.mxu1  ;;  %v798_v31 = vpop.f32.mrf.mxu3 }
 0x104   : > { %v761_v33 = vpop.f32.mrf.mxu2  ;;  %v715_v34 = vadd.f32 %v714_v32, %v671_v30 }
 0x106   : > { %v762_v36 = vadd.f32 %v761_v33, %v715_v34 }
 0x107   : > { %v675_v35 = vpop.f32.mrf.mxu0 }
 0x108   : > { %v676_v38 = vadd.f32 %v675_v35, %v631_v13  ;;  %v799_v37 = vadd.f32 %v798_v31, %v762_v36 }
 0x10a   : > { %v2274_v40 = vadd.f32 %v799_v37, %v495_v59 }
 0x10b   : > { %v720_v23 = vpop.f32.mrf.mxu1  ;;  %v802_v44 = vpop.f32.mrf.mxu3 }
 0x10c   : > { %v765_v42 = vpop.f32.mrf.mxu2  ;;  %v721_v43 = vadd.f32 %v720_v23, %v676_v38 }
 0x10e   : > { %v766_v45 = vadd.f32 %v765_v42, %v721_v43 }
 0x10f   : > { %v865_v41 = vpop.f32.mrf.mxu0 }
 0x110   : > { %v803_v46 = vadd.f32 %v802_v44, %v766_v45 }
 0x112   : > { %v2276_v47 = vadd.f32 %v803_v46, %v499_v62 }
 0x113   : > { %v930_v48 = vpop.f32.mrf.mxu1  ;;  %v1014_v49 = vpop.f32.mrf.mxu3 }
 0x114   : > { %v972_v39 = vpop.f32.mrf.mxu2  ;;  %v931_v3 = vadd.f32 %v930_v48, %v865_v41 }
 0x116   : > { %v973_v16 = vadd.f32 %v972_v39, %v931_v3 }
 0x117   : > { %v873_v50 = vpop.f32.mrf.mxu0 }
 0x118   : > { %v1015_v11 = vadd.f32 %v1014_v49, %v973_v16 }
 0x11b   : > { %v934_v52 = vpop.f32.mrf.mxu1  ;;  %v1020_v55 = vpop.f32.mrf.mxu3 }
 0x11c   : > { %v977_v53 = vpop.f32.mrf.mxu2  ;;  %v935_v19 = vadd.f32 %v934_v52, %v873_v50 }
 0x11e   : > { %v978_v27 = vadd.f32 %v977_v53, %v935_v19 }
 0x11f   : > { %v881_v28 = vpop.f32.mrf.mxu0 }
 0x120   : > { %v1021_v31 = vadd.f32 %v1020_v55, %v978_v27 }
 0x123   : > { %v938_v17 = vpop.f32.mrf.mxu1  ;;  %v1026_v57 = vpop.f32.mrf.mxu3 }
 0x124   : > { %v982_v51 = vpop.f32.mrf.mxu2  ;;  %v939_v34 = vadd.f32 %v938_v17, %v881_v28 }
 0x126   : > { %v983_v43 = vadd.f32 %v982_v51, %v939_v34 }
 0x127   : > { %v889_v60 = vpop.f32.mrf.mxu0 }
 0x128   : > { %v1027_v50 = vadd.f32 %v1026_v57, %v983_v43 }
 0x12b   : > { %v942_v61 = vpop.f32.mrf.mxu1  ;;  %v2280_v0 = vpop.f32.mrf.mxu3 }
 0x12c   : > { %v2278_v54 = vpop.f32.mrf.mxu2 }
 0x12f   : > { %v1065_v56 = vpop.f32.mrf.mxu0 }
 0x130   : > { %v1066_v21 = vadd.f32 %v1065_v56, %v1015_v11 }
 0x133   : > { %v1102_v58 = vpop.f32.mrf.mxu1  ;;  %v1242_v1 = vpop.f32.mrf.mxu3 }
 0x134   : > { %v1177_v59 = vpop.f32.mrf.mxu2  ;;  %v1103_v29 = vadd.f32 %v1102_v58, %v1066_v21 }
 0x135   : > { %v1243_v9 = vadd.f32 %v1242_v1, %v1177_v59 }
 0x136   : > { %v1121_v35 = vadd.f32 %v1103_v29, %v2270_v20  ;;  %v943_v20 = vadd.f32 %v942_v61, %v889_v60 }
 0x137   : > { %v1069_v6 = vpop.f32.mrf.mxu0 }
 0x138   : > { %v1070_v37 = vadd.f32 %v1069_v6, %v1021_v31  ;;  %v988_v59 = vadd.f32 %v2278_v54, %v943_v20 }
 0x13b   : > { %v1106_v7 = vpop.f32.mrf.mxu1  ;;  %v1246_v63 = vpop.f32.mrf.mxu3 }
 0x13c   : > { %v1185_v8 = vpop.f32.mrf.mxu2  ;;  %v1107_v41 = vadd.f32 %v1106_v7, %v1070_v37 }
 0x13d   : > { %v1247_v36 = vadd.f32 %v1246_v63, %v1185_v8 }
 0x13e   : > { %v1122_v52 = vadd.f32 %v1107_v41, %v2272_v4  ;;  %v1033_v4 = vadd.f32 %v2280_v0, %v988_v59 }
 0x13f   : > { %v1073_v2 = vpop.f32.mrf.mxu0 }
 0x140   : > { %v1074_v28 = vadd.f32 %v1073_v2, %v1027_v50 }
 0x143   : > { %v1110_v62 = vpop.f32.mrf.mxu1  ;;  %v1250_v13 = vpop.f32.mrf.mxu3 }
 0x144   : > { %v1193_v12 = vpop.f32.mrf.mxu2  ;;  %v1111_v1 = vadd.f32 %v1110_v62, %v1074_v28 }
 0x145   : > { %v1251_v53 = vadd.f32 %v1250_v13, %v1193_v12 }
 0x146   : > { %v1123_v60 = vadd.f32 %v1111_v1, %v2274_v40 }
 0x147   : > { %v1077_v14 = vpop.f32.mrf.mxu0 }
 0x148   : > { %v1078_v2 = vadd.f32 %v1077_v14, %v1033_v4 }
 0x14b   : > { %v2282_v15 = vpop.f32.mrf.mxu1  ;;  %v1254_v5 = vpop.f32.mrf.mxu3 }
 0x14c   : > { %v1201_v10 = vpop.f32.mrf.mxu2  ;;  %v1115_v3 = vadd.f32 %v2282_v15, %v1078_v2 }
 0x14d   : > { %v1255_v61 = vadd.f32 %v1254_v5, %v1201_v10 }
 0x14e   : > { %v1124_v14 = vadd.f32 %v1115_v3, %v2276_v47 }
 0x14f   : > { %v1284_v18 = vpop.f32.mrf.mxu0 }
 0x150   : > { %v1285_v24 = vadd.f32 %v1284_v18, %v1243_v9 }
 0x153   : > { %v1326_v25 = vpop.f32.mrf.mxu1  ;;  %v1414_v22 = vpop.f32.mrf.mxu3 }
 0x154   : > { %v1377_v26 = vpop.f32.mrf.mxu2  ;;  %v1327_v30 = vadd.f32 %v1326_v25, %v1285_v24 }
 0x156   : > { %v1378_v33 = vadd.f32 %v1377_v26, %v1327_v30 }
 0x157   : > { %v1289_v32 = vpop.f32.mrf.mxu0 }
 0x158   : > { %v1415_v38 = vadd.f32 %v1414_v22, %v1378_v33  ;;  %v1290_v23 = vadd.f32 %v1289_v32, %v1247_v36 }
 0x15a   : > { %v1433_v42 = vadd.f32 %v1415_v38, %v1121_v35 }
 0x15b   : > { %v1332_v44 = vpop.f32.mrf.mxu1  ;;  %v1418_v48 = vpop.f32.mrf.mxu3 }
 0x15c   : > { %v1381_v45 = vpop.f32.mrf.mxu2  ;;  %1445 = vst [vmem:[%s2286_s19] sm:$0xff] %v1433_v42  ;;  %v1333_v46 = vadd.f32 %v1332_v44, %v1290_v23 }
 0x15e   : > { %v1382_v49 = vadd.f32 %v1381_v45, %v1333_v46 }
 0x15f   : > { %v1294_v39 = vpop.f32.mrf.mxu0 }
 0x160   : > { %v1419_v55 = vadd.f32 %v1418_v48, %v1382_v49  ;;  %v1295_v17 = vadd.f32 %v1294_v39, %v1251_v53 }
 0x162   : > { %v1434_v51 = vadd.f32 %v1419_v55, %v1122_v52 }
 0x163   : > { %v1338_v56 = vpop.f32.mrf.mxu1  ;;  %v1422_v7 = vpop.f32.mrf.mxu3 }
 0x164   : > { %v1385_v58 = vpop.f32.mrf.mxu2  ;;  %1446 = vst [vmem:[%s2286_s19 + $0x8] sm:$0xff] %v1434_v51  ;;  %v1339_v6 = vadd.f32 %v1338_v56, %v1295_v17 }
 0x166   : > { %v1386_v8 = vadd.f32 %v1385_v58, %v1339_v6 }
 0x167   : > { %v1299_v57 = vpop.f32.mrf.mxu0 }
 0x168   : > { %v1423_v63 = vadd.f32 %v1422_v7, %v1386_v8  ;;  %v1300_v12 = vadd.f32 %v1299_v57, %v1255_v61 }
 0x16a   : > { %v1435_v13 = vadd.f32 %v1423_v63, %v1123_v60 }
 0x16b   : > { %v1344_v54 = vpop.f32.mrf.mxu1  ;;  %v1426_v40 = vpop.f32.mrf.mxu3 }
 0x16c   : > { %v1389_v62 = vpop.f32.mrf.mxu2  ;;  %1447 = vst [vmem:[%s2286_s19 + $0x10] sm:$0xff] %v1435_v13  ;;  %v1345_v0 = vadd.f32 %v1344_v54, %v1300_v12 }
 0x16e   : > { %v1390_v10 = vadd.f32 %v1389_v62, %v1345_v0 }
 0x170   : > { %v1427_v16 = vadd.f32 %v1426_v40, %v1390_v10 }
 0x172   : > { %v1436_v5 = vadd.f32 %v1427_v16, %v1124_v14 }
 0x174   : > { %1448 = vst [vmem:[%s2286_s19 + $0x18] sm:$0xff] %v1436_v5 }
 0x175   : > { %1759 = shalt.err (!%p1756_p12)
}
 0x176   : > { %s1823_s30 = smov 128   ;;  %s1824_s7 = smov 8  }
 0x177   : > { %1601 = dma.vmem_to_hbm [thread:$0]  (%p1921_p3), %s1465_s6, 512, %s1467_s12, %s1450_s16, %s1823_s30, %s1823_s30, %s1824_s7  }
 0x178 PF: > { %p1618_p13 = scmp.ge.s32.totalorder %s1818_s14, 2  ;;  %s1481_s15 = sand.u32 1, %s1798_s9  }
 0x179   : > { %s1482_s17 = scalar_lea.sflag [#allocation5], %s1481_s15 }
 0x17a   : > { %p1612_p0 = pnand %p1618_p13, %p1889_p6 }
 0x17c   : > { %p1613_p5 = pneg %p1612_p0 }
 0x17e   : > { %1793 = dma.done.wait (%p1613_p5), %s1482_s17, 512  }
 0x17f   : > { %1795 = vsyncadd (%p1613_p5), %s1482_s17, 4294966784  ;;  %s19_s14 = sadd.s32 1, %s1818_s14   ;;  %s2346_s9 = smov %s1802_s10 }
 0x180   : > { %p16_p7 = scmp.ge.s32.totalorder %s19_s14, 8   ;;  %s2347_s10 = smov %s1806_s11 }
 0x181   : > { %s2348_s11 = smov %s1930_s8  ;;  %s2349_s12 = smov %s1814_s13 }
 0x182   : > { %s2350_s13 = smov %s2352_s29  ;;  %18 = sbr.rel (!%p16_p7) target bundleno = 7 (0x7), region = 83 }
 0x187   :  { %1488 = vsyncpa [#allocation4], 1 }
 0x188   :  { %1490 = vsyncpa [#allocation4 + $0x1], 1 }
 0x189   :  { %1491 = vsyncpa [#allocation7], 1 }
 0x18a   :  { %1492 = vsyncpa [#allocation5], 1 }
 0x18b   :  { %1494 = vsyncpa [#allocation5 + $0x1], 1 }

</bundles_post_ra>
